<compile_context>
chip_gen: v6e
topology: v6e:2x2x1
jax: 0.10.0
libtpu: 0.0.40
codegen_flags: <defaults>
</compile_context>

<pallas_src>
import functools

import jax
import jax.numpy as jnp
from jax import lax
from jax.experimental import pallas as pl
from jax.experimental.pallas import tpu as pltpu


# -----------------------------------------------------------------------------
# Fused Pallas kernel: encoder -> gumbel quantizer -> gather/concat -> decoder
# -----------------------------------------------------------------------------
def _vqvae_fused_kernel(
    x_ref,        # (B, C, N)   point cloud, channels-first (PyTorch layout)
    cond_ref,     # (B, 1)      int32 class labels
    ew1_ref,      # (C, H)      encoder conv1 weight (in, out)
    eb1_ref,      # (1, H)
    ew2_ref,      # (H, Z)
    eb2_ref,      # (1, Z)
    emb_ref,      # (K, Z)      codebook
    g_ref,        # (B, K)      gumbel(0,1) noise
    cemb_ref,     # (NC, Dc)    class-embedding table
    dw1_ref,      # (Z+Dc, DH)
    db1_ref,      # (1, DH)
    dw2_ref,      # (DH, O)
    db2_ref,      # (1, O)
    zcat_ref,     # (B, Z+Dc)   out  (VMEM)
    recon_ref,    # (B, O)      out  (VMEM)
    loss_ref,     # (1, 1)      out  (SMEM scalar)
    *, tau, commitment_cost,
):
    B, C, N = x_ref.shape
    Z = ew2_ref.shape[1]
    NC = cemb_ref.shape[0]
    f32 = jnp.float32

    # ---- encoder: pointwise MLP + max-pool over points ----------------------
    # Channels-last relayout happens in VMEM/registers (no HBM transpose); the
    # two k=1 convs become flat 2-D matmuls over (B*N, C).
    x = x_ref[...]                                          # (B, C, N)
    x2 = jnp.transpose(x, (0, 2, 1)).reshape(B * N, C)      # (B*N, C)
    h = jnp.dot(x2, ew1_ref[...], preferred_element_type=f32) + eb1_ref[...]
    h = jnp.maximum(h, 0.0)                                 # ReLU
    f = jnp.dot(h, ew2_ref[...], preferred_element_type=f32) + eb2_ref[...]
    z = jnp.max(f.reshape(B, N, Z), axis=1)                 # (B, Z)

    # ---- Gumbel vector quantizer --------------------------------------------
    emb = emb_ref[...]                                      # (K, Z)
    # z @ emb.T without materializing a transpose (MXU trans_b form).
    scores = lax.dot_general(z, emb, (((1,), (1,)), ((), ())),
                             preferred_element_type=f32)    # (B, K)
    # ||emb_k||^2 as a (1, K) row, also via a trans_b matmul (no transpose).
    e2 = lax.dot_general(jnp.ones((1, Z), f32), emb * emb,
                         (((1,), (1,)), ((), ())),
                         preferred_element_type=f32)        # (1, K)
    # logits = -(||z||^2 + ||e||^2 - 2 z.e); the per-row ||z||^2 term is
    # constant over K and cancels exactly under the softmax, so it is dropped.
    y = (2.0 * scores - e2 + g_ref[...]) * (1.0 / tau)      # (B, K)
    m = jnp.max(y, axis=1, keepdims=True)
    p = jnp.exp(y - m)
    p = p * pl.reciprocal(jnp.sum(p, axis=1, keepdims=True), approx=True)
    q = jnp.dot(p, emb, preferred_element_type=f32)         # (B, Z)

    # loss = q_latent + commitment_cost * e_latent; in the forward pass both
    # terms equal mse(q, z). Scalar goes straight to SMEM.
    diff = q - z
    loss_ref[0, 0] = jnp.sum(diff * diff) * ((1.0 + commitment_cost) / (B * Z))

    # Straight-through estimator: forward value of z + (q - z).detach() is q.
    z_q = q

    # ---- class-condition gather (one-hot matmul) + concat --------------------
    labels = cond_ref[...]                                  # (B, 1) int32
    ids = lax.broadcasted_iota(jnp.int32, (B, NC), 1)
    onehot = (ids == labels).astype(f32)                    # (B, NC)
    cond_emb = jnp.dot(onehot, cemb_ref[...],
                       preferred_element_type=f32)          # (B, Dc)
    z_cat = jnp.concatenate([z_q, cond_emb], axis=1)        # (B, Z+Dc)
    zcat_ref[...] = z_cat

    # ---- decoder MLP ----------------------------------------------------------
    hd = jnp.dot(z_cat, dw1_ref[...], preferred_element_type=f32) + db1_ref[...]
    hd = jnp.maximum(hd, 0.0)
    recon_ref[...] = (jnp.dot(hd, dw2_ref[...], preferred_element_type=f32)
                      + db2_ref[...])


# -----------------------------------------------------------------------------
# Wrapper: one pallas_call, whole-array VMEM blocks (shapes are small), no grid
# -----------------------------------------------------------------------------
def vqvae_pointnet_forward(params, x_bcn, condition, gumbel_noise,
                           *, tau=1.0, commitment_cost=1.0):
    """x_bcn: (B, C, N) float32; condition: (B,) int class labels."""
    B, C, N = x_bcn.shape
    Z = params["enc_w2"].shape[1]
    Dc = params["cls_emb"].shape[1]
    out_dim = params["dec_w2"].shape[1]

    kernel = functools.partial(_vqvae_fused_kernel, tau=tau,
                               commitment_cost=commitment_cost)

    def vmem():
        return pl.BlockSpec(memory_space=pltpu.MemorySpace.VMEM)

    z_cat, recon_flat, loss = pl.pallas_call(
        kernel,
        out_shape=(
            jax.ShapeDtypeStruct((B, Z + Dc), jnp.float32),
            jax.ShapeDtypeStruct((B, out_dim), jnp.float32),
            jax.ShapeDtypeStruct((1, 1), jnp.float32),
        ),
        in_specs=[vmem() for _ in range(13)],
        out_specs=(
            vmem(),
            vmem(),
            pl.BlockSpec(memory_space=pltpu.MemorySpace.SMEM),
        ),
    )(
        x_bcn,
        condition.astype(jnp.int32).reshape(B, 1),
        params["enc_w1"], params["enc_b1"], params["enc_w2"], params["enc_b2"],
        params["codebook"], gumbel_noise, params["cls_emb"],
        params["dec_w1"], params["dec_b1"], params["dec_w2"], params["dec_b2"],
    )

    recon_pc = recon_flat.reshape(B, C, N)
    quant_loss = loss[0, 0]
    # Matches the PyTorch module's return: (z, z, z, recon_pc, quantization_loss)
    return z_cat, z_cat, z_cat, recon_pc, quant_loss


# -----------------------------------------------------------------------------
# Deterministic parameter construction
# -----------------------------------------------------------------------------
def make_params(key, *, in_dim, hidden, z_dim, condition_dim, num_classes,
                num_embeddings, dec_hidden, out_dim):
    ks = jax.random.split(key, 10)

    def u(k, shape, scale):
        return jax.random.uniform(k, shape, jnp.float32, -scale, scale)

    params = {
        # encoder: Conv1d(in_dim->hidden, k=1), Conv1d(hidden->z_dim, k=1)
        "enc_w1": u(ks[0], (in_dim, hidden), 1.0 / jnp.sqrt(in_dim)),
        "enc_b1": u(ks[1], (1, hidden), 1.0 / jnp.sqrt(in_dim)),
        "enc_w2": u(ks[2], (hidden, z_dim), 1.0 / jnp.sqrt(hidden)),
        "enc_b2": u(ks[3], (1, z_dim), 1.0 / jnp.sqrt(hidden)),
        # GumbelQuantizer codebook: uniform(-1/K, 1/K)
        "codebook": u(ks[4], (num_embeddings, z_dim), 1.0 / num_embeddings),
        # class embedding (nn.Embedding default: N(0, 1))
        "cls_emb": jax.random.normal(ks[5], (num_classes, condition_dim),
                                     jnp.float32),
        # decoder MLP
        "dec_w1": u(ks[6], (z_dim + condition_dim, dec_hidden),
                    1.0 / jnp.sqrt(z_dim + condition_dim)),
        "dec_b1": u(ks[7], (1, dec_hidden), 1.0 / jnp.sqrt(z_dim + condition_dim)),
        "dec_w2": u(ks[8], (dec_hidden, out_dim), 1.0 / jnp.sqrt(dec_hidden)),
        "dec_b2": u(ks[9], (1, out_dim), 1.0 / jnp.sqrt(dec_hidden)),
    }
    return params


if __name__ == "__main__":
    # small shapes consistent with the module
    B, C, N = 2, 3, 16          # point cloud: batch, xyz channels, points
    HIDDEN = 32                 # encoder hidden width
    Z_DIM = 32                  # latent / codebook embedding dim
    COND_DIM = 32               # condition embedding dim
    NUM_CLASSES = 8
    NUM_EMB = 512               # hard-coded in VQVAE_Pointnet
    DEC_HIDDEN = 64

    root = jax.random.PRNGKey(0)
    k_param, k_x, k_cond, k_gumbel = jax.random.split(root, 4)

    params = make_params(
        k_param, in_dim=C, hidden=HIDDEN, z_dim=Z_DIM, condition_dim=COND_DIM,
        num_classes=NUM_CLASSES, num_embeddings=NUM_EMB, dec_hidden=DEC_HIDDEN,
        out_dim=C * N)

    x = jax.random.normal(k_x, (B, C, N), jnp.float32)
    condition = jax.random.randint(k_cond, (B,), 0, NUM_CLASSES, jnp.int32)

    # gumbel(0,1) noise for F.gumbel_softmax (sampled on the host, deterministic)
    u01 = jax.random.uniform(k_gumbel, (B, NUM_EMB), jnp.float32,
                             minval=1e-20, maxval=1.0)
    gumbel_noise = -jnp.log(-jnp.log(u01))

    fwd = jax.jit(vqvae_pointnet_forward)
    z1, z2, z3, recon_pc, quant_loss = fwd(params, x, condition, gumbel_noise)
    jax.block_until_ready((z1, z2, z3, recon_pc, quant_loss))

    assert z1.shape == (B, Z_DIM + COND_DIM)
    assert recon_pc.shape == (B, C, N)
    assert quant_loss.shape == ()
    assert bool(jnp.isfinite(quant_loss))
    print("KERNEL_OK")
</pallas_src>

<mosaic_0001>
module attributes {stable_mosaic.version = 11 : i64} {
  func.func @_vqvae_fused_kernel(%arg0: memref<2x3x16xf32, #tpu.memory_space<vmem>>, %arg1: memref<2x1xi32, #tpu.memory_space<vmem>>, %arg2: memref<3x32xf32, #tpu.memory_space<vmem>>, %arg3: memref<1x32xf32, #tpu.memory_space<vmem>>, %arg4: memref<32x32xf32, #tpu.memory_space<vmem>>, %arg5: memref<1x32xf32, #tpu.memory_space<vmem>>, %arg6: memref<512x32xf32, #tpu.memory_space<vmem>>, %arg7: memref<2x512xf32, #tpu.memory_space<vmem>>, %arg8: memref<8x32xf32, #tpu.memory_space<vmem>>, %arg9: memref<64x64xf32, #tpu.memory_space<vmem>>, %arg10: memref<1x64xf32, #tpu.memory_space<vmem>>, %arg11: memref<64x48xf32, #tpu.memory_space<vmem>>, %arg12: memref<1x48xf32, #tpu.memory_space<vmem>>, %arg13: memref<2x64xf32, #tpu.memory_space<vmem>>, %arg14: memref<2x48xf32, #tpu.memory_space<vmem>>, %arg15: memref<1x1xf32, #tpu.memory_space<smem>>) attributes {dimension_semantics = [], scalar_prefetch = 0 : i64, scratch_operands = 0 : i64, tpu.core_type = #tpu.core_type<tc>} {
    %c0 = arith.constant 0 : index
    %c0_0 = arith.constant 0 : index
    %c0_1 = arith.constant 0 : index
    %0 = vector.load %arg0[%c0, %c0_0, %c0_1] : memref<2x3x16xf32, #tpu.memory_space<vmem>>, vector<2x3x16xf32>
    %1 = tpu.transpose %0, [0, 2, 1] : vector<2x3x16xf32> -> vector<2x16x3xf32>
    %2 = vector.shape_cast %1 : vector<2x16x3xf32> to vector<32x3xf32>
    %c0_2 = arith.constant 0 : index
    %c0_3 = arith.constant 0 : index
    %3 = vector.load %arg2[%c0_2, %c0_3] : memref<3x32xf32, #tpu.memory_space<vmem>>, vector<3x32xf32>
    %cst = arith.constant dense<0.000000e+00> : vector<32x32xf32>
    %4 = tpu.matmul %2, %3, %cst {dimension_numbers = #tpu.dot_dimension_numbers<[1], [0], [0], [1], [0, 0, 1, 1], [], []>} : vector<32x3xf32>, vector<3x32xf32>, vector<32x32xf32> -> vector<32x32xf32>
    %c0_4 = arith.constant 0 : index
    %c0_5 = arith.constant 0 : index
    %5 = vector.load %arg3[%c0_4, %c0_5] : memref<1x32xf32, #tpu.memory_space<vmem>>, vector<1x32xf32>
    %6 = vector.broadcast %5 : vector<1x32xf32> to vector<32x32xf32>
    %7 = arith.addf %4, %6 : vector<32x32xf32>
    %cst_6 = arith.constant 0.000000e+00 : f32
    %8 = vector.broadcast %cst_6 : f32 to vector<32x32xf32>
    %9 = arith.maximumf %7, %8 : vector<32x32xf32>
    %c0_7 = arith.constant 0 : index
    %c0_8 = arith.constant 0 : index
    %10 = vector.load %arg4[%c0_7, %c0_8] : memref<32x32xf32, #tpu.memory_space<vmem>>, vector<32x32xf32>
    %cst_9 = arith.constant dense<0.000000e+00> : vector<32x32xf32>
    %11 = tpu.matmul %9, %10, %cst_9 {dimension_numbers = #tpu.dot_dimension_numbers<[1], [0], [0], [1], [0, 0, 1, 1], [], []>} : vector<32x32xf32>, vector<32x32xf32>, vector<32x32xf32> -> vector<32x32xf32>
    %c0_10 = arith.constant 0 : index
    %c0_11 = arith.constant 0 : index
    %12 = vector.load %arg5[%c0_10, %c0_11] : memref<1x32xf32, #tpu.memory_space<vmem>>, vector<1x32xf32>
    %13 = vector.broadcast %12 : vector<1x32xf32> to vector<32x32xf32>
    %14 = arith.addf %11, %13 : vector<32x32xf32>
    %15 = vector.shape_cast %14 : vector<32x32xf32> to vector<2x16x32xf32>
    %cst_12 = arith.constant dense<0xFF800000> : vector<2x32xf32>
    %16 = vector.multi_reduction <maximumf>, %15, %cst_12 [1] : vector<2x16x32xf32> to vector<2x32xf32>
    %c0_13 = arith.constant 0 : index
    %c0_14 = arith.constant 0 : index
    %17 = vector.load %arg6[%c0_13, %c0_14] : memref<512x32xf32, #tpu.memory_space<vmem>>, vector<512x32xf32>
    %cst_15 = arith.constant dense<0.000000e+00> : vector<2x512xf32>
    %18 = tpu.matmul %16, %17, %cst_15 {dimension_numbers = #tpu.dot_dimension_numbers<[1], [1], [0], [0], [0, 0, 1, 0], [], []>} : vector<2x32xf32>, vector<512x32xf32>, vector<2x512xf32> -> vector<2x512xf32>
    %cst_16 = arith.constant 1.000000e+00 : f32
    %19 = vector.broadcast %cst_16 : f32 to vector<1x32xf32>
    %20 = arith.mulf %17, %17 : vector<512x32xf32>
    %cst_17 = arith.constant dense<0.000000e+00> : vector<1x512xf32>
    %21 = tpu.matmul %19, %20, %cst_17 {dimension_numbers = #tpu.dot_dimension_numbers<[1], [1], [0], [0], [0, 0, 1, 0], [], []>} : vector<1x32xf32>, vector<512x32xf32>, vector<1x512xf32> -> vector<1x512xf32>
    %cst_18 = arith.constant 2.000000e+00 : f32
    %22 = vector.broadcast %cst_18 : f32 to vector<2x512xf32>
    %23 = arith.mulf %22, %18 : vector<2x512xf32>
    %24 = vector.broadcast %21 : vector<1x512xf32> to vector<2x512xf32>
    %25 = arith.subf %23, %24 : vector<2x512xf32>
    %c0_19 = arith.constant 0 : index
    %c0_20 = arith.constant 0 : index
    %26 = vector.load %arg7[%c0_19, %c0_20] : memref<2x512xf32, #tpu.memory_space<vmem>>, vector<2x512xf32>
    %27 = arith.addf %25, %26 : vector<2x512xf32>
    %cst_21 = arith.constant 1.000000e+00 : f32
    %28 = vector.broadcast %cst_21 : f32 to vector<2x512xf32>
    %29 = arith.mulf %27, %28 : vector<2x512xf32>
    %cst_22 = arith.constant dense<0xFF800000> : vector<2xf32>
    %30 = vector.multi_reduction <maximumf>, %29, %cst_22 [1] : vector<2x512xf32> to vector<2xf32>
    %31 = vector.shape_cast %30 : vector<2xf32> to vector<2x1xf32>
    %32 = vector.broadcast %31 : vector<2x1xf32> to vector<2x512xf32>
    %33 = arith.subf %29, %32 : vector<2x512xf32>
    %34 = math.exp %33 : vector<2x512xf32>
    %cst_23 = arith.constant dense<0.000000e+00> : vector<2xf32>
    %35 = vector.multi_reduction <add>, %34, %cst_23 [1] : vector<2x512xf32> to vector<2xf32>
    %36 = vector.shape_cast %35 : vector<2xf32> to vector<2x1xf32>
    %37 = tpu.reciprocal %36 {approx = true} : vector<2x1xf32> -> vector<2x1xf32>
    %38 = vector.broadcast %37 : vector<2x1xf32> to vector<2x512xf32>
    %39 = arith.mulf %34, %38 : vector<2x512xf32>
    %cst_24 = arith.constant dense<0.000000e+00> : vector<2x32xf32>
    %40 = tpu.matmul %39, %17, %cst_24 {dimension_numbers = #tpu.dot_dimension_numbers<[1], [0], [0], [1], [0, 0, 1, 1], [], []>} : vector<2x512xf32>, vector<512x32xf32>, vector<2x32xf32> -> vector<2x32xf32>
    %41 = arith.subf %40, %16 : vector<2x32xf32>
    %42 = arith.mulf %41, %41 : vector<2x32xf32>
    %43 = vector.shape_cast %42 : vector<2x32xf32> to vector<1x2x32xf32>
    %cst_25 = arith.constant dense<0.000000e+00> : vector<1xf32>
    %44 = vector.multi_reduction <add>, %43, %cst_25 [1, 2] : vector<1x2x32xf32> to vector<1xf32>
    %45 = vector.shape_cast %44 : vector<1xf32> to vector<1x1x1xf32>
    %46 = vector.extract %45[0, 0, 0] : f32 from vector<1x1x1xf32>
    %cst_26 = arith.constant 3.125000e-02 : f32
    %47 = arith.mulf %46, %cst_26 : f32
    %c0_27 = arith.constant 0 : index
    %c0_28 = arith.constant 0 : index
    %48 = memref.load %arg15[%c0_27, %c0_28] : memref<1x1xf32, #tpu.memory_space<smem>>
    memref.store %47, %arg15[%c0_27, %c0_28] : memref<1x1xf32, #tpu.memory_space<smem>>
    %c0_29 = arith.constant 0 : index
    %c0_30 = arith.constant 0 : index
    %49 = vector.load %arg1[%c0_29, %c0_30] : memref<2x1xi32, #tpu.memory_space<vmem>>, vector<2x1xi32>
    %50 = tpu.iota {dimensions = array<i32: 1>} : vector<2x8xi32>
    %51 = vector.broadcast %49 : vector<2x1xi32> to vector<2x8xi32>
    %52 = arith.cmpi eq, %50, %51 : vector<2x8xi32>
    %53 = arith.extui %52 : vector<2x8xi1> to vector<2x8xi32>
    %54 = arith.sitofp %53 : vector<2x8xi32> to vector<2x8xf32>
    %c0_31 = arith.constant 0 : index
    %c0_32 = arith.constant 0 : index
    %55 = vector.load %arg8[%c0_31, %c0_32] : memref<8x32xf32, #tpu.memory_space<vmem>>, vector<8x32xf32>
    %cst_33 = arith.constant dense<0.000000e+00> : vector<2x32xf32>
    %56 = tpu.matmul %54, %55, %cst_33 {dimension_numbers = #tpu.dot_dimension_numbers<[1], [0], [0], [1], [0, 0, 1, 1], [], []>} : vector<2x8xf32>, vector<8x32xf32>, vector<2x32xf32> -> vector<2x32xf32>
    %57 = tpu.concatenate %40, %56 in 1 : vector<2x32xf32>, vector<2x32xf32> -> vector<2x64xf32>
    %c0_34 = arith.constant 0 : index
    %c0_35 = arith.constant 0 : index
    %58 = vector.load %arg13[%c0_34, %c0_35] : memref<2x64xf32, #tpu.memory_space<vmem>>, vector<2x64xf32>
    tpu.vector_store %arg13[%c0_34, %c0_35], %57 {strides = array<i32>} : memref<2x64xf32, #tpu.memory_space<vmem>>, vector<2x64xf32>,
    %c0_36 = arith.constant 0 : index
    %c0_37 = arith.constant 0 : index
    %59 = vector.load %arg9[%c0_36, %c0_37] : memref<64x64xf32, #tpu.memory_space<vmem>>, vector<64x64xf32>
    %cst_38 = arith.constant dense<0.000000e+00> : vector<2x64xf32>
    %60 = tpu.matmul %57, %59, %cst_38 {dimension_numbers = #tpu.dot_dimension_numbers<[1], [0], [0], [1], [0, 0, 1, 1], [], []>} : vector<2x64xf32>, vector<64x64xf32>, vector<2x64xf32> -> vector<2x64xf32>
    %c0_39 = arith.constant 0 : index
    %c0_40 = arith.constant 0 : index
    %61 = vector.load %arg10[%c0_39, %c0_40] : memref<1x64xf32, #tpu.memory_space<vmem>>, vector<1x64xf32>
    %62 = vector.broadcast %61 : vector<1x64xf32> to vector<2x64xf32>
    %63 = arith.addf %60, %62 : vector<2x64xf32>
    %cst_41 = arith.constant 0.000000e+00 : f32
    %64 = vector.broadcast %cst_41 : f32 to vector<2x64xf32>
    %65 = arith.maximumf %63, %64 : vector<2x64xf32>
    %c0_42 = arith.constant 0 : index
    %c0_43 = arith.constant 0 : index
    %66 = vector.load %arg11[%c0_42, %c0_43] : memref<64x48xf32, #tpu.memory_space<vmem>>, vector<64x48xf32>
    %cst_44 = arith.constant dense<0.000000e+00> : vector<2x48xf32>
    %67 = tpu.matmul %65, %66, %cst_44 {dimension_numbers = #tpu.dot_dimension_numbers<[1], [0], [0], [1], [0, 0, 1, 1], [], []>} : vector<2x64xf32>, vector<64x48xf32>, vector<2x48xf32> -> vector<2x48xf32>
    %c0_45 = arith.constant 0 : index
    %c0_46 = arith.constant 0 : index
    %68 = vector.load %arg12[%c0_45, %c0_46] : memref<1x48xf32, #tpu.memory_space<vmem>>, vector<1x48xf32>
    %69 = vector.broadcast %68 : vector<1x48xf32> to vector<2x48xf32>
    %70 = arith.addf %67, %69 : vector<2x48xf32>
    %c0_47 = arith.constant 0 : index
    %c0_48 = arith.constant 0 : index
    %71 = vector.load %arg14[%c0_47, %c0_48] : memref<2x48xf32, #tpu.memory_space<vmem>>, vector<2x48xf32>
    tpu.vector_store %arg14[%c0_47, %c0_48], %70 {strides = array<i32>} : memref<2x48xf32, #tpu.memory_space<vmem>>, vector<2x48xf32>,
    return
  }
}

</mosaic_0001>

<bundles_post_ra>
// kernel: vqvae_pointnet_forward.1
= control target key start
LH: loop header
LB: loop body
LE: loop exit
PB: predicated region body
PF: predicated region fallthrough
CT: control target
= control target key end

     0   :  { %vm135_vm0 = vcmask 1042432   ;;  %s3132_s0 = inlined_call_operand.vmem [shape: f32[2,3,16], index: 0, kind: input, shape index: {}]   ;;  %s3133_s1 = inlined_call_operand.vmem [shape: s32[2,1], index: 1, kind: input, shape index: {}]   ;;  %s3134_s2 = inlined_call_operand.vmem [shape: f32[3,32], index: 2, kind: input, shape index: {}]   ;;  %s3135_s3 = inlined_call_operand.vmem [shape: f32[1,32], index: 3, kind: input, shape index: {}]   ;;  %s3136_s4 = inlined_call_operand.vmem [shape: f32[32,32], index: 4, kind: input, shape index: {}]   ;;  %s3137_s5 = inlined_call_operand.vmem [shape: f32[1,32], index: 5, kind: input, shape index: {}]   ;;  %s3138_s6 = inlined_call_operand.vmem [shape: f32[512,32], index: 6, kind: input, shape index: {}]   ;;  %s3139_s7 = inlined_call_operand.vmem [shape: f32[2,512], index: 7, kind: input, shape index: {}]   ;;  %s3140_s8 = inlined_call_operand.vmem [shape: f32[8,32], index: 8, kind: input, shape index: {}]   ;;  %s3141_s9 = inlined_call_operand.vmem [shape: f32[64,64], index: 9, kind: input, shape index: {}]   ;;  %s3142_s10 = inlined_call_operand.vmem [shape: f32[1,64], index: 10, kind: input, shape index: {}]   ;;  %s3143_s11 = inlined_call_operand.vmem [shape: f32[64,48], index: 11, kind: input, shape index: {}]   ;;  %s3144_s12 = inlined_call_operand.vmem [shape: f32[1,48], index: 12, kind: input, shape index: {}]   ;;  %s3145_s13 = inlined_call_operand.vmem [shape: f32[2,64], index: 13, kind: output, shape index: {0}]   ;;  %s3146_s14 = inlined_call_operand.vmem [shape: f32[2,48], index: 14, kind: output, shape index: {1}]   ;;  %s3147_s15 = inlined_call_operand.hbm [shape: f32[1,1], index: 15, kind: output, shape index: {2}]  }
   0x1   :  { %v48_v0 = vld [vmem:[%s3132_s0] sm:$0x7] }
   0x2   :  { %50 = vxpose.xlu0.b32.start.end [1/1] (short) (narrow) %v48_v0, 16  ;;  %v114_v1 = vld [vmem:[%s3134_s2] sm:$0x7] }
   0x3   :  { %21 = vsyncpa [#allocation3], 0  ;;  %2084 = vmatprep.subr.msk.mxu0 %vm135_vm0, %v114_v1  ;;  %v49_v2 = vld [vmem:[%s3132_s0 + $0x4] sm:$0x7]  ;;  %vm122_vm1 = vcmask 23552   ;;  %v231_v7 = vld [vmem:[%s3136_s4 + $0x18] sm:$0xff] }
   0x4   :  { %2085 = vmatpush3.msk.msra.mxu0 %vm135_vm0, %v114_v1  ;;  %2092 = vmatprep.subr.mxu1 %v231_v7  ;;  %v230_v8 = vld [vmem:[%s3136_s4 + $0x10] sm:$0xff]  ;;  %v229_v9 = vld [vmem:[%s3136_s4 + $0x8] sm:$0xff]  ;;  %v228_v10 = vld [vmem:[%s3136_s4] sm:$0xff]  ;;  %vm239_vm2 = vcmask 261120   ;;  %vm421_vm3 = vcmask 1041409   ;;  %vm1211_vm4 = vcmask 1041408  }
   0x5   :  { %2093 = vmatpush3.msra.mxu1 %v231_v7  ;;  %v2292_v11 = vld [vmem:[%s3138_s6 + $0xf8] sm:$0xff]  ;;  %v2311_v14 = vld [vmem:[%s3138_s6 + $0xf0] sm:$0xff]  ;;  %v2325_v16 = vld [vmem:[%s3138_s6 + $0xe8] sm:$0xff]  ;;  %vm2185_vm6 = vmmov 0   ;;  %vm1414_vm7 = vcmask 64512   ;;  %s2186_s29 = smov 32  }
   0x6   :  { %2094 = vmatprep.subr.mxu1 %v230_v8  ;;  %3191 = vst [vmem:[#allocation5_spill] sm:$0xff] %v2292_v11  ;;  %v2297_v12 = vld [vmem:[%s3138_s6 + $0x1f8] sm:$0xff]  ;;  %1858 = vmatprep.subr.msk.mxu0 %vm239_vm2, %v2292_v11  ;;  %v2320_v15 = vld [vmem:[%s3138_s6 + $0x70] sm:$0xff]  ;;  %v2334_v17 = vld [vmem:[%s3138_s6 + $0x68] sm:$0xff]  ;;  %vm1390_vm8 = vcmask 254976   ;;  %vm1493_vm9 = vcmask 517120  }
   0x7   :  { %82 = vxpose.xlu0.b32.start.end [1/1] (short) (narrow) %v49_v2, 16  ;;  %2095 = vmatpush3.msra.mxu1 %v230_v8  ;;  %3192 = vst [vmem:[#allocation6_spill] sm:$0xff] %v2297_v12  ;;  %v2302_v13 = vld [vmem:[%s3138_s6 + $0x78] sm:$0xff]  ;;  %v2339_v18 = vld [vmem:[%s3138_s6 + $0xe0] sm:$0xff]  ;;  %v2367_v22 = vld [vmem:[%s3138_s6 + $0xd0] sm:$0xff]  ;;  %vm1510_vm10 = vcmask 523264  }
   0x8   :  { %2096 = vmatprep.subr.mxu1 %v229_v9  ;;  %v2348_v19 = vld [vmem:[%s3138_s6 + $0x60] sm:$0xff]  ;;  %v2353_v20 = vld [vmem:[%s3138_s6 + $0xd8] sm:$0xff]  ;;  %v2376_v23 = vld [vmem:[%s3138_s6 + $0x50] sm:$0xff]  ;;  %s2187_s0 = smov [#allocation2]   ;;  %vm1673_vm11 = vcmask 386048  }
   0x9   :  { %2097 = vmatpush3.msra.mxu1 %v229_v9  ;;  %v2362_v21 = vld [vmem:[%s3138_s6 + $0x58] sm:$0xff]  ;;  %v2381_v24 = vld [vmem:[%s3138_s6 + $0xc8] sm:$0xff]  ;;  %v2395_v26 = vld [vmem:[%s3138_s6 + $0xc0] sm:$0xff] }
   0xa   :  { %2098 = vmatprep.subr.mxu1 %v228_v10  ;;  %v2390_v25 = vld [vmem:[%s3138_s6 + $0x48] sm:$0xff]  ;;  %v2404_v27 = vld [vmem:[%s3138_s6 + $0x40] sm:$0xff]  ;;  %v2409_v28 = vld [vmem:[%s3138_s6 + $0xb8] sm:$0xff] }
   0xb   :  { %2099 = vmatpush3.msra.mxu1 %v228_v10  ;;  %v2418_v29 = vld [vmem:[%s3138_s6 + $0x38] sm:$0xff]  ;;  %v1696_v30 = vld [vmem:[%s3135_s3] ss:$0 sm:$0xff]  ;;  %v2434_v38 = vld [vmem:[%s3138_s6 + $0x1f0] sm:$0xff] }
   0xc   :  { %1892 = vmatprep.subr.msk.mxu1 %vm239_vm2, %v2297_v12  ;;  %v2428_v37 = vld [vmem:[%s3138_s6 + $0x178] sm:$0xff]  ;;  %v2444_v42 = vld [vmem:[%s3138_s6 + $0x170] sm:$0xff]  ;;  %v2449_v44 = vld [vmem:[%s3138_s6 + $0x1e8] sm:$0xff] }
   0xd   :  { %v2458_v47 = vld [vmem:[%s3138_s6 + $0x168] sm:$0xff]  ;;  %v2464_v48 = vld [vmem:[%s3138_s6 + $0x1e0] sm:$0xff]  ;;  %v2479_v50 = vld [vmem:[%s3138_s6 + $0x1d8] sm:$0xff] }
   0xe   :  { %v2474_v49 = vld [vmem:[%s3138_s6 + $0x160] sm:$0xff]  ;;  %v2488_v51 = vld [vmem:[%s3138_s6 + $0x158] sm:$0xff]  ;;  %v2493_v52 = vld [vmem:[%s3138_s6 + $0x1d0] sm:$0xff] }
   0xf   :  { %v2502_v53 = vld [vmem:[%s3138_s6 + $0x150] sm:$0xff]  ;;  %v2507_v54 = vld [vmem:[%s3138_s6 + $0x1c8] sm:$0xff]  ;;  %v2521_v56 = vld [vmem:[%s3138_s6 + $0x1c0] sm:$0xff] }
  0x10   :  { %v2516_v55 = vld [vmem:[%s3138_s6 + $0x148] sm:$0xff]  ;;  %v2530_v57 = vld [vmem:[%s3138_s6 + $0x140] sm:$0xff]  ;;  %v2535_v58 = vld [vmem:[%s3138_s6 + $0x1b8] sm:$0xff] }
  0x11   :  { %v2544_v59 = vld [vmem:[%s3138_s6 + $0x138] sm:$0xff]  ;;  %v2551_v60 = vld [vmem:[%s3138_s6 + $0xb0] sm:$0xff]  ;;  %v2579_v0 = vld [vmem:[%s3138_s6 + $0xa8] sm:$0xff] }
  0x12   :  { %v2556_v61 = vld [vmem:[%s3138_s6 + $0x1b0] sm:$0xff]  ;;  %v2584_v1 = vld [vmem:[%s3138_s6 + $0x1a8] sm:$0xff]  ;;  %v2626_v7 = vld [vmem:[%s3138_s6 + $0x120] sm:$0xff] }
  0x13   :  { %v2565_v62 = vld [vmem:[%s3138_s6 + $0x30] sm:$0xff]  ;;  %v2593_v2 = vld [vmem:[%s3138_s6 + $0x28] sm:$0xff]  ;;  %3195 = vst [vmem:[#allocation9_spill] sm:$0xff] %v2626_v7  ;;  %v2635_v8 = vld [vmem:[%s3138_s6 + $0x98] sm:$0xff] }
  0x14   :  { %v2570_v63 = vld [vmem:[%s3138_s6 + $0x130] sm:$0xff]  ;;  %3196 = vst [vmem:[#allocation10_spill] sm:$0xff] %v2635_v8  ;;  %v2640_v9 = vld [vmem:[%s3138_s6 + $0x198] sm:$0xff] }
  0x15   :  { %3197 = vst [vmem:[#allocation11_spill] sm:$0xff] %v2640_v9  ;;  %v2649_v10 = vld [vmem:[%s3138_s6 + $0x18] sm:$0xff] }
  0x16   :  { %3198 = vst [vmem:[#allocation12_spill] sm:$0xff] %v2649_v10 }
  0x7e   :  { %v66_v3 = vpop.trf.xlu0 }
  0x7f   :  { %2086 = vmatprep.mubr.msk.f32.mxu0 %vm122_vm1, %v66_v3  ;;  %v2598_v3 = vld [vmem:[%s3138_s6 + $0x128] sm:$0xff] }
  0x82   :  { %v67_v4 = vpop.trf.xlu0 }
  0x83   :  { %2087 = vmatmul.mubr.msk.f32.vlgmr.msra.gmra.mxu0 %vm122_vm1, %v67_v4  ;;  %v2607_v4 = vld [vmem:[%s3138_s6 + $0xa0] sm:$0xff] }
  0x84   :  { %1859 = vmatpush3.xpose.msk.msra.mxu0 %vm239_vm2, %v2302_v13 }
  0x85   :  { %1860 = vmatprep.subr.msk.mxu0 %vm239_vm2, %v2311_v14 }
  0x86   :  { %v98_v5 = vpop.trf.xlu0 }
  0x87   :  { %2089 = vmatprep.mubr.msk.f32.mxu0 %vm122_vm1, %v98_v5  ;;  %v2612_v5 = vld [vmem:[%s3138_s6 + $0x1a0] sm:$0xff] }
  0x88   :  { %1861 = vmatpush3.xpose.msk.msra.mxu0 %vm239_vm2, %v2320_v15  ;;  %3193 = vst [vmem:[#allocation7_spill] sm:$0xff] %v2612_v5 }
  0x89   :  { %1862 = vmatprep.subr.msk.mxu0 %vm239_vm2, %v2325_v16 }
  0x8a   :  { %v99_v6 = vpop.trf.xlu0 }
  0x8b   :  { %2090 = vmatmul.mubr.msk.f32.gmra.mxu0 %vm122_vm1, %v99_v6  ;;  %v2621_v6 = vld [vmem:[%s3138_s6 + $0x20] sm:$0xff] }
  0x8c   :  { %1863 = vmatpush3.xpose.msk.msra.mxu0 %vm239_vm2, %v2334_v17  ;;  %3194 = vst [vmem:[#allocation8_spill] sm:$0xff] %v2621_v6 }
  0x8d   :  { %1864 = vmatprep.subr.msk.mxu0 %vm239_vm2, %v2339_v18 }
  0x90   :  { %1865 = vmatpush3.xpose.msk.msra.mxu0 %vm239_vm2, %v2348_v19 }
  0x91   :  { %1866 = vmatprep.subr.msk.mxu0 %vm239_vm2, %v2353_v20 }
  0x94   :  { %1867 = vmatpush3.xpose.msk.msra.mxu0 %vm239_vm2, %v2362_v21 }
  0x95   :  { %1868 = vmatprep.subr.msk.mxu0 %vm239_vm2, %v2367_v22 }
  0x98   :  { %1869 = vmatpush3.xpose.msk.msra.mxu0 %vm239_vm2, %v2376_v23 }
  0x99   :  { %1870 = vmatprep.subr.msk.mxu0 %vm239_vm2, %v2381_v24 }
  0x9c   :  { %1871 = vmatpush3.xpose.msk.msra.mxu0 %vm239_vm2, %v2390_v25 }
  0x9d   :  { %1872 = vmatprep.subr.msk.mxu0 %vm239_vm2, %v2395_v26 }
  0xa0   :  { %1873 = vmatpush3.xpose.msk.msra.mxu0 %vm239_vm2, %v2404_v27 }
  0xa1   :  { %1874 = vmatprep.subr.msk.mxu0 %vm239_vm2, %v2409_v28 }
  0xa4   :  { %1875 = vmatpush3.xpose.msk.msra.mxu0 %vm239_vm2, %v2418_v29 }
  0xa5   :  { %1876 = vmatprep.subr.msk.mxu0 %vm239_vm2, %v2551_v60 }
  0xa8   :  { %1877 = vmatpush3.xpose.msk.msra.mxu0 %vm239_vm2, %v2565_v62 }
  0xa9   :  { %1878 = vmatprep.subr.msk.mxu0 %vm239_vm2, %v2579_v0 }
  0xac   :  { %1879 = vmatpush3.xpose.msk.msra.mxu0 %vm239_vm2, %v2593_v2 }
  0xad   :  { %1880 = vmatprep.subr.msk.mxu0 %vm239_vm2, %v2607_v4 }
  0xb0   :  { %1881 = vmatpush3.xpose.msk.msra.mxu0 %vm239_vm2, %v2621_v6 }
  0xb1   :  { %1882 = vmatprep.subr.msk.mxu0 %vm239_vm2, %v2635_v8 }
  0xb4   :  { %1883 = vmatpush3.xpose.msk.msra.mxu0 %vm239_vm2, %v2649_v10 }
 0x143   :  { %v2088_v31 = vpop.f32.mrf.mxu0 }
 0x144   :  { %v211_v32 = vadd.f32 %v2088_v31, %v1696_v30  ;;  %v2663_v31 = vld [vmem:[%s3138_s6 + $0x90] sm:$0xff] }
 0x145   :  { %v205_v33 = vpop.f32.mrf.mxu0  ;;  %3200 = vst [vmem:[#allocation14_spill] sm:$0xff] %v2663_v31  ;;  %1884 = vmatprep.subr.msk.mxu0 %vm239_vm2, %v2663_v31 }
 0x146   :  { %v206_v34 = vadd.f32 %v1696_v30, %v205_v33  ;;  %v225_v36 = vmax.f32 %v211_v32, 0.0  ;;  %v2668_v32 = vld [vmem:[%s3138_s6 + $0x190] sm:$0xff] }
 0x147   :  { %3201 = vst [vmem:[#allocation15_spill] sm:$0xff] %v2668_v32  ;;  %v2677_v33 = vld [vmem:[%s3138_s6 + $0x10] sm:$0xff] }
 0x148   :  { %v224_v35 = vmax.f32 %v206_v34, 0.0  ;;  %3202 = vst [vmem:[#allocation16_spill] sm:$0xff] %v2677_v33  ;;  %v2682_v34 = vld [vmem:[%s3138_s6 + $0x110] sm:$0xff]  ;;  %1885 = vmatpush3.xpose.msk.msra.mxu0 %vm239_vm2, %v2677_v33 }
 0x149   :  { %3203 = vst [vmem:[#allocation17_spill] sm:$0xff] %v2682_v34 }
 0x14a   :  { %2100 = vmatprep.mubr.msk.f32.mxu1 %vm239_vm2, %v224_v35  ;;  %v2691_v35 = vld [vmem:[%s3138_s6 + $0x88] sm:$0xff] }
 0x14b   :  { %v2091_v39 = vpop.f32.mrf.mxu0  ;;  %2101 = vmatmul.mubr.msk.f32.vlgmr.msra.gmra.mxu1 %vm239_vm2, %v225_v36  ;;  %3204 = vst [vmem:[#allocation18_spill] sm:$0xff] %v2691_v35  ;;  %v2696_v36 = vld [vmem:[%s3138_s6 + $0x188] sm:$0xff]  ;;  %1886 = vmatprep.subr.msk.mxu0 %vm239_vm2, %v2691_v35 }
 0x14c   :  { %1893 = vmatpush3.xpose.msk.msra.mxu1 %vm239_vm2, %v2428_v37  ;;  %v221_v40 = vadd.f32 %v2091_v39, %v1696_v30  ;;  %3205 = vst [vmem:[#allocation19_spill] sm:$0xff] %v2696_v36  ;;  %v2705_v39 = vld [vmem:[%s3138_s6 + $0x8] sm:$0xff] }
 0x14d   :  { %v215_v41 = vpop.f32.mrf.mxu0  ;;  %1894 = vmatprep.subr.msk.mxu1 %vm239_vm2, %v2434_v38  ;;  %3206 = vst [vmem:[#allocation20_spill] sm:$0xff] %v2705_v39  ;;  %1887 = vmatpush3.xpose.msk.msra.mxu0 %vm239_vm2, %v2705_v39 }
 0x14e   :  { %v216_v43 = vadd.f32 %v1696_v30, %v215_v41  ;;  %v227_v46 = vmax.f32 %v221_v40, 0.0  ;;  %v2654_v30 = vld [vmem:[%s3138_s6 + $0x118] sm:$0xff]  ;;  %v2710_v40 = vld [vmem:[%s3138_s6 + $0x108] sm:$0xff]  ;;  %v790_v41 = vmul.f32 %v2292_v11, %v2292_v11  ;;  %v2737_v11 = vld [vmem:[%s3138_s6] sm:$0xff] }
 0x14f   :  { %3199 = vst [vmem:[#allocation13_spill] sm:$0xff] %v2654_v30  ;;  %3207 = vst [vmem:[#allocation21_spill] sm:$0xff] %v2710_v40 }
 0x150   :  { %v226_v45 = vmax.f32 %v216_v43, 0.0  ;;  %1895 = vmatpush3.xpose.msk.msra.mxu1 %vm239_vm2, %v2444_v42  ;;  %v2721_v43 = vld [vmem:[%s3138_s6 + $0x80] sm:$0xff]  ;;  %3210 = vst [vmem:[#allocation24_spill] sm:$0xff] %v2737_v11 }
 0x151   :  { %1896 = vmatprep.subr.msk.mxu1 %vm239_vm2, %v2449_v44  ;;  %3208 = vst [vmem:[#allocation22_spill] sm:$0xff] %v2721_v43  ;;  %1888 = vmatprep.subr.msk.mxu0 %vm239_vm2, %v2721_v43 }
 0x152   :  { %2103 = vmatprep.mubr.msk.f32.mxu1 %vm239_vm2, %v226_v45  ;;  %v2726_v45 = vld [vmem:[%s3138_s6 + $0x180] sm:$0xff]  ;;  %1889 = vmatpush3.xpose.msk.msra.mxu0 %vm239_vm2, %v2737_v11 }
 0x153   :  { %2104 = vmatmul.mubr.msk.f32.gmra.mxu1 %vm239_vm2, %v227_v46  ;;  %3209 = vst [vmem:[#allocation23_spill] sm:$0xff] %v2726_v45  ;;  %v822_v46 = vmul.f32 %v2297_v12, %v2297_v12  ;;  %1926 = vmatprep.subr.msk.mxu0 %vm239_vm2, %v790_v41  ;;  %v1702_v12 = vld [vmem:[%s3137_s5] ss:$0 sm:$0xff] }
 0x154   :  { %1897 = vmatpush3.xpose.msk.msra.mxu1 %vm239_vm2, %v2458_v47 }
 0x155   :  { %1898 = vmatprep.subr.msk.mxu1 %vm239_vm2, %v2464_v48 }
 0x158   :  { %1899 = vmatpush3.xpose.msk.msra.mxu1 %vm239_vm2, %v2474_v49 }
 0x159   :  { %1900 = vmatprep.subr.msk.mxu1 %vm239_vm2, %v2479_v50 }
 0x15c   :  { %1901 = vmatpush3.xpose.msk.msra.mxu1 %vm239_vm2, %v2488_v51 }
 0x15d   :  { %1902 = vmatprep.subr.msk.mxu1 %vm239_vm2, %v2493_v52 }
 0x160   :  { %1903 = vmatpush3.xpose.msk.msra.mxu1 %vm239_vm2, %v2502_v53 }
 0x161   :  { %1904 = vmatprep.subr.msk.mxu1 %vm239_vm2, %v2507_v54 }
 0x164   :  { %1905 = vmatpush3.xpose.msk.msra.mxu1 %vm239_vm2, %v2516_v55 }
 0x165   :  { %1906 = vmatprep.subr.msk.mxu1 %vm239_vm2, %v2521_v56 }
 0x168   :  { %1907 = vmatpush3.xpose.msk.msra.mxu1 %vm239_vm2, %v2530_v57 }
 0x169   :  { %1908 = vmatprep.subr.msk.mxu1 %vm239_vm2, %v2535_v58 }
 0x16c   :  { %1909 = vmatpush3.xpose.msk.msra.mxu1 %vm239_vm2, %v2544_v59 }
 0x16d   :  { %1910 = vmatprep.subr.msk.mxu1 %vm239_vm2, %v2556_v61 }
 0x170   :  { %1911 = vmatpush3.xpose.msk.msra.mxu1 %vm239_vm2, %v2570_v63 }
 0x171   :  { %1912 = vmatprep.subr.msk.mxu1 %vm239_vm2, %v2584_v1 }
 0x174   :  { %1913 = vmatpush3.xpose.msk.msra.mxu1 %vm239_vm2, %v2598_v3 }
 0x175   :  { %1914 = vmatprep.subr.msk.mxu1 %vm239_vm2, %v2612_v5 }
 0x178   :  { %1915 = vmatpush3.xpose.msk.msra.mxu1 %vm239_vm2, %v2626_v7 }
 0x179   :  { %1916 = vmatprep.subr.msk.mxu1 %vm239_vm2, %v2640_v9 }
 0x17c   :  { %1917 = vmatpush3.xpose.msk.msra.mxu1 %vm239_vm2, %v2654_v30 }
 0x17d   :  { %1918 = vmatprep.subr.msk.mxu1 %vm239_vm2, %v2668_v32 }
 0x180   :  { %1919 = vmatpush3.xpose.msk.msra.mxu1 %vm239_vm2, %v2682_v34 }
 0x181   :  { %1920 = vmatprep.subr.msk.mxu1 %vm239_vm2, %v2696_v36 }
 0x184   :  { %1921 = vmatpush3.xpose.msk.msra.mxu1 %vm239_vm2, %v2710_v40  ;;  %v2742_v40 = vld [vmem:[%s3138_s6 + $0x100] sm:$0xff] }
 0x185   :  { %1922 = vmatprep.subr.msk.mxu1 %vm239_vm2, %v2726_v45  ;;  %3211 = vst [vmem:[#allocation25_spill] sm:$0xff] %v2742_v40 }
 0x188   :  { %1923 = vmatpush3.xpose.msk.msra.mxu1 %vm239_vm2, %v2742_v40 }
 0x189   :  { %1960 = vmatprep.subr.msk.mxu1 %vm239_vm2, %v822_v46 }
 0x20b   :  { %v2102_v45 = vpop.f32.mrf.mxu1 }
 0x20c   :  { %v324_v43 = vadd.f32 %v2102_v45, %v1702_v12 }
 0x20d   :  { %v318_v39 = vpop.f32.mrf.mxu1 }
 0x20e   :  { %v319_v36 = vadd.f32 %v1702_v12, %v318_v39  ;;  %v338_v35 = vsel %vm239_vm2, %v324_v43, -inf }
 0x210   :  { %v337_v34 = vsel %vm239_vm2, %v319_v36, -inf }
 0x211   :  { %v339_v11 = vmax.f32 %v337_v34, %v338_v35 }
 0x213   :  { %v340_v33 = vrot.slane %v339_v11, 4  ;;  %v2105_v32 = vpop.f32.mrf.mxu1 }
 0x214   :  { %v334_v40 = vadd.f32 %v2105_v32, %v1702_v12  ;;  %v772_v32 = vmul.f32 %v2334_v17, %v2334_v17 }
 0x215   :  { %v341_v31 = vmax.f32 %v339_v11, %v340_v33  ;;  %v328_v41 = vpop.f32.mrf.mxu1  ;;  %v774_v11 = vmul.f32 %v2302_v13, %v2302_v13  ;;  %v804_v33 = vmul.f32 %v2458_v47, %v2458_v47 }
 0x216   :  { %v329_v30 = vadd.f32 %v1702_v12, %v328_v41  ;;  %v347_v46 = vsel %vm239_vm2, %v334_v40, -inf  ;;  %v806_v12 = vmul.f32 %v2428_v37, %v2428_v37  ;;  %v787_v40 = vmul.f32 %v2339_v18, %v2339_v18 }
 0x217   :  { %v342_v9 = vrot.slane %v341_v31, 2  ;;  %v819_v41 = vmul.f32 %v2464_v48, %v2464_v48 }
 0x218   :  { %v346_v10 = vsel %vm239_vm2, %v329_v30, -inf  ;;  %v789_v30 = vmul.f32 %v2311_v14, %v2311_v14 }
 0x219   :  { %v348_v8 = vmax.f32 %v346_v10, %v347_v46  ;;  %v343_v7 = vmax.f32 %v341_v31, %v342_v9  ;;  %v821_v9 = vmul.f32 %v2434_v38, %v2434_v38  ;;  %v820_v10 = vmul.f32 %v2449_v44, %v2449_v44 }
 0x21a   :  { %v3188_v31 = vmov 1.0   ;;  %v771_v46 = vmul.f32 %v2348_v19, %v2348_v19 }
 0x21b   :  { %v349_v45 = vrot.slane %v348_v8, 4  ;;  %v344_v43 = vrot.slane %v343_v7, 1 }
 0x21d   :  { %v350_v39 = vmax.f32 %v348_v8, %v349_v45  ;;  %v345_v34 = vmax.f32 %v343_v7, %v344_v43  ;;  %v788_v7 = vmul.f32 %v2325_v16, %v2325_v16  ;;  %v803_v45 = vmul.f32 %v2474_v49, %v2474_v49 }
 0x21e   :  { %v818_v43 = vmul.f32 %v2479_v50, %v2479_v50 }
 0x21f   :  { %v351_v6 = vrot.slane %v350_v39, 2 }
 0x221   :  { %v352_v5 = vmax.f32 %v350_v39, %v351_v6  ;;  %v805_v6 = vmul.f32 %v2444_v42, %v2444_v42  ;;  %v786_v39 = vmul.f32 %v2353_v20, %v2353_v20 }
 0x223   :  { %v353_v36 = vrot.slane %v352_v5, 1 }
 0x225   :  { %v354_v35 = vmax.f32 %v352_v5, %v353_v36  ;;  %v773_v5 = vmul.f32 %v2320_v15, %v2320_v15  ;;  %v770_v36 = vmul.f32 %v2362_v21, %v2362_v21 }
 0x227   :  { %v2765_v8 = vsel %vm421_vm3, %v354_v35, %v345_v34  ;;  %v802_v34 = vmul.f32 %v2488_v51, %v2488_v51  ;;  %v785_v35 = vmul.f32 %v2367_v22, %v2367_v22 }
 0x228   :  { %3212 = vst [vmem:[#allocation26_spill] sm:$0xff] %v2765_v8  ;;  %1890 = vmatprep.mubr.msk.f32.mxu0 %vm239_vm2, %v2765_v8  ;;  %1924 = vmatprep.mubr.msk.f32.mxu1 %vm239_vm2, %v2765_v8 }
 0x229   :  { %1891 = vmatmul.mubr.msk.f32.vlgmr.msra.gmra.mxu0 %vm239_vm2, %v2765_v8  ;;  %1925 = vmatmul.mubr.msk.f32.vlgmr.msra.gmra.mxu1 %vm239_vm2, %v2765_v8 }
 0x22a   :  { %1927 = vmatpush3.xpose.msk.msra.mxu0 %vm239_vm2, %v774_v11  ;;  %1961 = vmatpush3.xpose.msk.msra.mxu1 %vm239_vm2, %v806_v12  ;;  %v817_v11 = vmul.f32 %v2493_v52, %v2493_v52  ;;  %v769_v12 = vmul.f32 %v2376_v23, %v2376_v23 }
 0x22b   :  { %1928 = vmatprep.subr.msk.mxu0 %vm239_vm2, %v789_v30  ;;  %1962 = vmatprep.subr.msk.mxu1 %vm239_vm2, %v821_v9  ;;  %v801_v30 = vmul.f32 %v2502_v53, %v2502_v53  ;;  %v784_v9 = vmul.f32 %v2381_v24, %v2381_v24 }
 0x22c   :  { %1958 = vmatprep.mubr.msk.f32.mxu0 %vm239_vm2, %v3188_v31  ;;  %1992 = vmatprep.mubr.msk.f32.mxu1 %vm239_vm2, %v3188_v31  ;;  %v3223_v31 = vld [vmem:[#allocation17_spill] sm:$0xff] }
 0x22d   :  { %v793_v8 = vmul.f32 %v3223_v31, %v3223_v31 }
 0x22e   :  { %1929 = vmatpush3.xpose.msk.msra.mxu0 %vm239_vm2, %v773_v5  ;;  %1963 = vmatpush3.xpose.msk.msra.mxu1 %vm239_vm2, %v805_v6  ;;  %v816_v5 = vmul.f32 %v2507_v54, %v2507_v54  ;;  %v768_v6 = vmul.f32 %v2390_v25, %v2390_v25 }
 0x22f   :  { %1930 = vmatprep.subr.msk.mxu0 %vm239_vm2, %v788_v7  ;;  %1964 = vmatprep.subr.msk.mxu1 %vm239_vm2, %v820_v10  ;;  %v800_v7 = vmul.f32 %v2516_v55, %v2516_v55  ;;  %v783_v10 = vmul.f32 %v2395_v26, %v2395_v26 }
 0x232   :  { %1931 = vmatpush3.xpose.msk.msra.mxu0 %vm239_vm2, %v772_v32  ;;  %1965 = vmatpush3.xpose.msk.msra.mxu1 %vm239_vm2, %v804_v33  ;;  %v815_v32 = vmul.f32 %v2521_v56, %v2521_v56  ;;  %v767_v33 = vmul.f32 %v2404_v27, %v2404_v27 }
 0x233   :  { %1932 = vmatprep.subr.msk.mxu0 %vm239_vm2, %v787_v40  ;;  %1966 = vmatprep.subr.msk.mxu1 %vm239_vm2, %v819_v41  ;;  %v799_v40 = vmul.f32 %v2530_v57, %v2530_v57  ;;  %v782_v41 = vmul.f32 %v2409_v28, %v2409_v28 }
 0x236   :  { %1933 = vmatpush3.xpose.msk.msra.mxu0 %vm239_vm2, %v771_v46  ;;  %1967 = vmatpush3.xpose.msk.msra.mxu1 %vm239_vm2, %v803_v45  ;;  %v814_v46 = vmul.f32 %v2535_v58, %v2535_v58  ;;  %v766_v45 = vmul.f32 %v2418_v29, %v2418_v29 }
 0x237   :  { %1934 = vmatprep.subr.msk.mxu0 %vm239_vm2, %v786_v39  ;;  %1968 = vmatprep.subr.msk.mxu1 %vm239_vm2, %v818_v43  ;;  %v798_v39 = vmul.f32 %v2544_v59, %v2544_v59  ;;  %v781_v43 = vmul.f32 %v2551_v60, %v2551_v60 }
 0x23a   :  { %1935 = vmatpush3.xpose.msk.msra.mxu0 %vm239_vm2, %v770_v36  ;;  %1969 = vmatpush3.xpose.msk.msra.mxu1 %vm239_vm2, %v802_v34  ;;  %v813_v36 = vmul.f32 %v2556_v61, %v2556_v61  ;;  %v765_v34 = vmul.f32 %v2565_v62, %v2565_v62 }
 0x23b   :  { %1936 = vmatprep.subr.msk.mxu0 %vm239_vm2, %v785_v35  ;;  %1970 = vmatprep.subr.msk.mxu1 %vm239_vm2, %v817_v11  ;;  %v797_v35 = vmul.f32 %v2570_v63, %v2570_v63  ;;  %v780_v11 = vmul.f32 %v2579_v0, %v2579_v0 }
 0x23e   :  { %1937 = vmatpush3.xpose.msk.msra.mxu0 %vm239_vm2, %v769_v12  ;;  %1971 = vmatpush3.xpose.msk.msra.mxu1 %vm239_vm2, %v801_v30  ;;  %v812_v12 = vmul.f32 %v2584_v1, %v2584_v1  ;;  %v764_v30 = vmul.f32 %v2593_v2, %v2593_v2 }
 0x23f   :  { %1938 = vmatprep.subr.msk.mxu0 %vm239_vm2, %v784_v9  ;;  %1972 = vmatprep.subr.msk.mxu1 %vm239_vm2, %v816_v5  ;;  %v796_v9 = vmul.f32 %v2598_v3, %v2598_v3  ;;  %v779_v5 = vmul.f32 %v2607_v4, %v2607_v4 }
 0x242   :  { %1939 = vmatpush3.xpose.msk.msra.mxu0 %vm239_vm2, %v768_v6  ;;  %1973 = vmatpush3.xpose.msk.msra.mxu1 %vm239_vm2, %v800_v7  ;;  %v3213_v6 = vld [vmem:[#allocation7_spill] sm:$0xff] }
 0x243   :  { %1940 = vmatprep.subr.msk.mxu0 %vm239_vm2, %v783_v10  ;;  %1974 = vmatprep.subr.msk.mxu1 %vm239_vm2, %v815_v32  ;;  %v811_v7 = vmul.f32 %v3213_v6, %v3213_v6  ;;  %v3214_v10 = vld [vmem:[#allocation8_spill] sm:$0xff] }
 0x244   :  { %v763_v32 = vmul.f32 %v3214_v10, %v3214_v10 }
 0x246   :  { %1941 = vmatpush3.xpose.msk.msra.mxu0 %vm239_vm2, %v767_v33  ;;  %1975 = vmatpush3.xpose.msk.msra.mxu1 %vm239_vm2, %v799_v40  ;;  %v3215_v33 = vld [vmem:[#allocation9_spill] sm:$0xff] }
 0x247   :  { %1942 = vmatprep.subr.msk.mxu0 %vm239_vm2, %v782_v41  ;;  %1976 = vmatprep.subr.msk.mxu1 %vm239_vm2, %v814_v46  ;;  %v795_v40 = vmul.f32 %v3215_v33, %v3215_v33  ;;  %v3216_v41 = vld [vmem:[#allocation10_spill] sm:$0xff] }
 0x248   :  { %v778_v46 = vmul.f32 %v3216_v41, %v3216_v41 }
 0x24a   :  { %1943 = vmatpush3.xpose.msk.msra.mxu0 %vm239_vm2, %v766_v45  ;;  %1977 = vmatpush3.xpose.msk.msra.mxu1 %vm239_vm2, %v798_v39  ;;  %v3217_v45 = vld [vmem:[#allocation11_spill] sm:$0xff] }
 0x24b   :  { %1944 = vmatprep.subr.msk.mxu0 %vm239_vm2, %v781_v43  ;;  %1978 = vmatprep.subr.msk.mxu1 %vm239_vm2, %v813_v36  ;;  %v810_v39 = vmul.f32 %v3217_v45, %v3217_v45  ;;  %v3218_v43 = vld [vmem:[#allocation12_spill] sm:$0xff] }
 0x24c   :  { %v762_v36 = vmul.f32 %v3218_v43, %v3218_v43 }
 0x24e   :  { %1945 = vmatpush3.xpose.msk.msra.mxu0 %vm239_vm2, %v765_v34  ;;  %1979 = vmatpush3.xpose.msk.msra.mxu1 %vm239_vm2, %v797_v35  ;;  %v3219_v34 = vld [vmem:[#allocation13_spill] sm:$0xff] }
 0x24f   :  { %1946 = vmatprep.subr.msk.mxu0 %vm239_vm2, %v780_v11  ;;  %1980 = vmatprep.subr.msk.mxu1 %vm239_vm2, %v812_v12  ;;  %v794_v35 = vmul.f32 %v3219_v34, %v3219_v34  ;;  %v3220_v11 = vld [vmem:[#allocation14_spill] sm:$0xff] }
 0x250   :  { %v777_v12 = vmul.f32 %v3220_v11, %v3220_v11  ;;  %v3225_v11 = vld [vmem:[#allocation19_spill] sm:$0xff] }
 0x252   :  { %1947 = vmatpush3.xpose.msk.msra.mxu0 %vm239_vm2, %v764_v30  ;;  %1981 = vmatpush3.xpose.msk.msra.mxu1 %vm239_vm2, %v796_v9  ;;  %v3221_v30 = vld [vmem:[#allocation15_spill] sm:$0xff] }
 0x253   :  { %1948 = vmatprep.subr.msk.mxu0 %vm239_vm2, %v779_v5  ;;  %1982 = vmatprep.subr.msk.mxu1 %vm239_vm2, %v811_v7  ;;  %v809_v9 = vmul.f32 %v3221_v30, %v3221_v30  ;;  %v3222_v5 = vld [vmem:[#allocation16_spill] sm:$0xff]  ;;  %v808_v30 = vmul.f32 %v3225_v11, %v3225_v11 }
 0x254   :  { %v761_v7 = vmul.f32 %v3222_v5, %v3222_v5  ;;  %v3227_v5 = vld [vmem:[#allocation21_spill] sm:$0xff] }
 0x255   :  { %v792_v31 = vmul.f32 %v3227_v5, %v3227_v5 }
 0x256   :  { %1949 = vmatpush3.xpose.msk.msra.mxu0 %vm239_vm2, %v763_v32  ;;  %1983 = vmatpush3.xpose.msk.msra.mxu1 %vm239_vm2, %v795_v40  ;;  %v3224_v32 = vld [vmem:[#allocation18_spill] sm:$0xff] }
 0x257   :  { %1950 = vmatprep.subr.msk.mxu0 %vm239_vm2, %v778_v46  ;;  %1984 = vmatprep.subr.msk.mxu1 %vm239_vm2, %v810_v39  ;;  %v776_v40 = vmul.f32 %v3224_v32, %v3224_v32  ;;  %v3226_v46 = vld [vmem:[#allocation20_spill] sm:$0xff]  ;;  %v3229_v32 = vld [vmem:[#allocation23_spill] sm:$0xff] }
 0x258   :  { %v760_v39 = vmul.f32 %v3226_v46, %v3226_v46  ;;  %v807_v11 = vmul.f32 %v3229_v32, %v3229_v32  ;;  %v3231_v46 = vld [vmem:[#allocation25_spill] sm:$0xff] }
 0x259   :  { %v791_v5 = vmul.f32 %v3231_v46, %v3231_v46 }
 0x25a   :  { %1951 = vmatpush3.xpose.msk.msra.mxu0 %vm239_vm2, %v762_v36  ;;  %1985 = vmatpush3.xpose.msk.msra.mxu1 %vm239_vm2, %v794_v35  ;;  %v3228_v36 = vld [vmem:[#allocation22_spill] sm:$0xff] }
 0x25b   :  { %1952 = vmatprep.subr.msk.mxu0 %vm239_vm2, %v777_v12  ;;  %1986 = vmatprep.subr.msk.mxu1 %vm239_vm2, %v809_v9  ;;  %v775_v35 = vmul.f32 %v3228_v36, %v3228_v36  ;;  %v3230_v12 = vld [vmem:[#allocation24_spill] sm:$0xff] }
 0x25c   :  { %v759_v9 = vmul.f32 %v3230_v12, %v3230_v12 }
 0x25e   :  { %1953 = vmatpush3.xpose.msk.msra.mxu0 %vm239_vm2, %v761_v7  ;;  %1987 = vmatpush3.xpose.msk.msra.mxu1 %vm239_vm2, %v793_v8  ;;  %v3232_v8 = vld [vmem:[#allocation5_spill] sm:$0xff]  ;;  %v3234_v7 = vmov 1.0  }
 0x25f   :  { %1954 = vmatprep.subr.msk.mxu0 %vm239_vm2, %v776_v40  ;;  %1988 = vmatprep.subr.msk.mxu1 %vm239_vm2, %v808_v30  ;;  %v3233_v30 = vld [vmem:[#allocation6_spill] sm:$0xff] }
 0x262   :  { %1955 = vmatpush3.xpose.msk.msra.mxu0 %vm239_vm2, %v760_v39  ;;  %1989 = vmatpush3.xpose.msk.msra.mxu1 %vm239_vm2, %v792_v31 }
 0x263   :  { %1956 = vmatprep.subr.msk.mxu0 %vm239_vm2, %v775_v35  ;;  %1990 = vmatprep.subr.msk.mxu1 %vm239_vm2, %v807_v11 }
 0x266   :  { %1957 = vmatpush3.xpose.msk.msra.mxu0 %vm239_vm2, %v759_v9  ;;  %1991 = vmatpush3.xpose.msk.msra.mxu1 %vm239_vm2, %v791_v5  ;;  %v2183_v5 = vmov 0  }
 0x267   :  { %1994 = vmatprep.subr.mxu0 %v3232_v8  ;;  %2029 = vmatprep.subr.mxu1 %v3233_v30 }
 0x268   :  { %2158 = vset.pattern.permute.xlu1 %v2183_v5  ;;  %2159 = vset.pattern.permute.xlu0 %v2183_v5 }
 0x269   :  { %1959 = vmatmul.mubr.msk.f32.vlgmr.msra.gmra.mxu0 %vm239_vm2, %v3234_v7  ;;  %1993 = vmatmul.mubr.msk.f32.vlgmr.msra.gmra.mxu1 %vm239_vm2, %v3234_v7 }
 0x26a   :  { %1995 = vmatpush3.msra.mxu0 %v2302_v13  ;;  %2030 = vmatpush3.msra.mxu1 %v2428_v37  ;;  %v3235_v13 = vld [vmem:[#allocation14_spill] sm:$0xff] }
 0x26b   :  { %1996 = vmatprep.subr.mxu0 %v2311_v14  ;;  %2031 = vmatprep.subr.mxu1 %v2434_v38  ;;  %v3236_v14 = vld [vmem:[#allocation15_spill] sm:$0xff] }
 0x26c   :  { %1997 = vmatpush3.msra.mxu0 %v2320_v15  ;;  %2032 = vmatpush3.msra.mxu1 %v2444_v42  ;;  %v3237_v15 = vld [vmem:[#allocation16_spill] sm:$0xff] }
 0x26d   :  { %1998 = vmatprep.subr.mxu0 %v2325_v16  ;;  %2033 = vmatprep.subr.mxu1 %v2449_v44  ;;  %v3238_v16 = vld [vmem:[#allocation17_spill] sm:$0xff] }
 0x26e   :  { %1999 = vmatpush3.msra.mxu0 %v2334_v17  ;;  %2034 = vmatpush3.msra.mxu1 %v2458_v47  ;;  %v3239_v17 = vld [vmem:[#allocation18_spill] sm:$0xff] }
 0x26f   :  { %2000 = vmatprep.subr.mxu0 %v2339_v18  ;;  %2035 = vmatprep.subr.mxu1 %v2464_v48  ;;  %v3240_v18 = vld [vmem:[#allocation19_spill] sm:$0xff] }
 0x270   :  { %2001 = vmatpush3.msra.mxu0 %v2348_v19  ;;  %2036 = vmatpush3.msra.mxu1 %v2474_v49  ;;  %v3241_v19 = vld [vmem:[#allocation20_spill] sm:$0xff] }
 0x271   :  { %2002 = vmatprep.subr.mxu0 %v2353_v20  ;;  %2037 = vmatprep.subr.mxu1 %v2479_v50  ;;  %v3242_v20 = vld [vmem:[#allocation21_spill] sm:$0xff] }
 0x272   :  { %2003 = vmatpush3.msra.mxu0 %v2362_v21  ;;  %2038 = vmatpush3.msra.mxu1 %v2488_v51  ;;  %v2182_v21 = vmov 1983009808  }
 0x273   :  { %2004 = vmatprep.subr.mxu0 %v2367_v22  ;;  %2039 = vmatprep.subr.mxu1 %v2493_v52  ;;  %v1188_v22 = vunpack.c.l.s4 %v2182_v21 }
 0x274   :  { %2005 = vmatpush3.msra.mxu0 %v2376_v23  ;;  %2040 = vmatpush3.msra.mxu1 %v2502_v53  ;;  %v1164_v23 = vlaneseq }
 0x275   :  { %2006 = vmatprep.subr.mxu0 %v2381_v24  ;;  %2041 = vmatprep.subr.mxu1 %v2507_v54  ;;  %v1189_v24 = vunpack.c.0.s8 %v1188_v22  ;;  %v1404_v22 = vld [vmem:[%s3133_s1] sm:$0x3] }
 0x276   :  { %2007 = vmatpush3.msra.mxu0 %v2390_v25  ;;  %2042 = vmatpush3.msra.mxu1 %v2516_v55  ;;  %v1184_v25 = vld [vmem:[%s3139_s7] sm:$0xff] }
 0x277   :  { %2008 = vmatprep.subr.mxu0 %v2395_v26  ;;  %2043 = vmatprep.subr.mxu1 %v2521_v56  ;;  %v1165_v26 = vshrl.u32 %v1164_v23, 7  ;;  %v1186_v37 = vcombine.high %v1184_v25, %v1184_v25 }
 0x278   :  { %2009 = vmatpush3.msra.mxu0 %v2404_v27  ;;  %2044 = vmatpush3.msra.mxu1 %v2530_v57 }
 0x279   :  { %2010 = vmatprep.subr.mxu0 %v2409_v28  ;;  %2045 = vmatprep.subr.mxu1 %v2535_v58  ;;  %v1166_v38 = vsub.s32 0, %v1165_v26 }
 0x27a   :  { %2011 = vmatpush3.msra.mxu0 %v2418_v29  ;;  %2046 = vmatpush3.msra.mxu1 %v2544_v59  ;;  %v1192_v29 = vsub.s32 %v1189_v24, %v1165_v26  ;;  %v2184_v24 = vmov 0.0   ;;  %v1406_v26 = vand.u32 127, %v1164_v23  ;;  %v1502_v23 = vld [vmem:[%s3141_s9 + $0x38] sm:$0xff] }
 0x27b   :  { %2012 = vmatprep.subr.mxu0 %v2551_v60  ;;  %2047 = vmatprep.subr.mxu1 %v2556_v61 }
 0x27c   :  { %2013 = vmatpush3.msra.mxu0 %v2565_v62  ;;  %2048 = vmatpush3.msra.mxu1 %v2570_v63  ;;  %v1193_v47 = vrot.slane %v1184_v25, %v1192_v29  ;;  %v1200_v48 = vrot.slane %v1186_v37, %v1192_v29 }
 0x27d   :  { %2014 = vmatprep.subr.mxu0 %v2579_v0  ;;  %2049 = vmatprep.subr.mxu1 %v2584_v1 }
 0x27e   :  { %2015 = vmatpush3.msra.mxu0 %v2593_v2  ;;  %2050 = vmatpush3.msra.mxu1 %v2598_v3  ;;  %v1201_v58 = vcombine.high %v1193_v47, %v1193_v47  ;;  %v1202_v60 = vcombine.high %v1200_v48, %v1200_v48 }
 0x27f   :  { %2016 = vmatprep.subr.mxu0 %v2607_v4  ;;  %2051 = vmatprep.subr.mxu1 %v3213_v6 }
 0x280   :  { %2017 = vmatpush3.msra.mxu0 %v3214_v10  ;;  %2052 = vmatpush3.msra.mxu1 %v3215_v33 }
 0x281   :  { %2018 = vmatprep.subr.mxu0 %v3216_v41  ;;  %2053 = vmatprep.subr.mxu1 %v3217_v45 }
 0x282   :  { %2019 = vmatpush3.msra.mxu0 %v3218_v43  ;;  %2054 = vmatpush3.msra.mxu1 %v3219_v34 }
 0x283   :  { %2020 = vmatprep.subr.mxu0 %v3235_v13  ;;  %2055 = vmatprep.subr.mxu1 %v3236_v14 }
 0x284   :  { %2021 = vmatpush3.msra.mxu0 %v3237_v15  ;;  %2056 = vmatpush3.msra.mxu1 %v3238_v16 }
 0x285   :  { %2022 = vmatprep.subr.mxu0 %v3239_v17  ;;  %2057 = vmatprep.subr.mxu1 %v3240_v18 }
 0x286   :  { %2023 = vmatpush3.msra.mxu0 %v3241_v19  ;;  %2058 = vmatpush3.msra.mxu1 %v3242_v20 }
 0x287   :  { %2024 = vmatprep.subr.mxu0 %v3228_v36  ;;  %2059 = vmatprep.subr.mxu1 %v3229_v32 }
 0x288   :  { %2025 = vmatpush3.msra.mxu0 %v3230_v12  ;;  %2060 = vmatpush3.msra.mxu1 %v3231_v46 }
 0x289   :  { %2106 = vmatprep.subr.mxu0 %v2184_v24  ;;  %2130 = vmatprep.subr.mxu1 %v2184_v24 }
 0x2e9   :  { %v683_v27 = vpop.f32.mrf.mxu0  ;;  %v754_v28 = vpop.f32.mrf.mxu1 }
 0x2ea   :  { %v1160_v51 = vmul.f32 2.0, %v683_v27  ;;  %v1162_v52 = vmul.f32 2.0, %v754_v28 }
 0x2eb   :  { %v685_v42 = vpop.f32.mrf.mxu0  ;;  %v756_v44 = vpop.f32.mrf.mxu1 }
 0x2ec   :  { %v1161_v55 = vmul.f32 2.0, %v685_v42  ;;  %v1163_v56 = vmul.f32 2.0, %v756_v44  ;;  %v1413_v44 = vld [vmem:[%s3140_s8] sm:$0xff] }
 0x329   :  { %v1084_v49 = vpop.f32.mrf.mxu0  ;;  %v1155_v50 = vpop.f32.mrf.mxu1 }
 0x32a   :  { %v1167_v53 = vrot.slane %v1084_v49, %v1166_v38  ;;  %v1175_v54 = vrot.slane %v1155_v50, %v1166_v38  ;;  %v1500_v49 = vld [vmem:[%s3141_s9 + $0x28] sm:$0xff]  ;;  %v1499_v50 = vld [vmem:[%s3141_s9 + $0x20] sm:$0xff] }
 0x32b   :  { %v1086_v57 = vpop.f32.mrf.mxu0  ;;  %v1157_v59 = vpop.f32.mrf.mxu1 }
 0x32c   :  { %v1180_v61 = vsub.f32 %v1160_v51, %v1167_v53  ;;  %v1182_v62 = vsub.f32 %v1162_v52, %v1175_v54  ;;  %v1171_v63 = vrot.slane %v1086_v57, %v1166_v38  ;;  %v1179_v0 = vrot.slane %v1157_v59, %v1166_v38  ;;  %v1498_v51 = vld [vmem:[%s3141_s9 + $0x18] sm:$0xff]  ;;  %v1497_v52 = vld [vmem:[%s3141_s9 + $0x10] sm:$0xff]  ;;  %v1496_v53 = vld [vmem:[%s3141_s9 + $0x8] sm:$0xff] }
 0x32d   :  { %v1495_v54 = vld [vmem:[%s3141_s9] sm:$0xff] }
 0x32e   :  { %v1207_v1 = vadd.f32 %v1193_v47, %v1180_v61  ;;  %v1209_v2 = vadd.f32 %v1200_v48, %v1182_v62  ;;  %v1181_v3 = vsub.f32 %v1161_v55, %v1171_v63  ;;  %v1183_v4 = vsub.f32 %v1163_v56, %v1179_v0  ;;  %v1501_v48 = vld [vmem:[%s3141_s9 + $0x30] sm:$0xff]  ;;  %v3243_v0 = vld [vmem:[#allocation26_spill] sm:$0xff] }
 0x330   :  { %v1208_v31 = vadd.f32 %v1201_v58, %v1181_v3  ;;  %v1210_v6 = vadd.f32 %v1202_v60, %v1183_v4  ;;  %v1212_v10 = vsel %vm1211_vm4, %v1207_v1, -inf  ;;  %v1214_v41 = vsel %vm1211_vm4, %v1209_v2, -inf  ;;  %v1592_v4 = vld [vmem:[%s3143_s11 + $0x38] sm:$0xff] }
 0x332   :  { %v1213_v33 = vsel %vm1211_vm4, %v1208_v31, -inf  ;;  %v1215_v45 = vsel %vm1211_vm4, %v1210_v6, -inf }
 0x333   :  { %v1216_v43 = vmax.f32 %v1212_v10, %v1213_v33  ;;  %v1217_v34 = vmax.f32 %v1214_v41, %v1215_v45  ;;  %v1589_v10 = vld [vmem:[%s3143_s11 + $0x20] sm:$0xff]  ;;  %v1588_v33 = vld [vmem:[%s3143_s11 + $0x18] sm:$0xff] }
 0x335   :  { %v1218_v11 = vmax.f32 %v1216_v43, %v1217_v34 }
 0x337   :  { %1219 = vmax.xlane.f32.xlu1 %v1218_v11 }
 0x3c0   :  { %v1220_v32 = vpop.xlane.xlu1 %1219 }
 0x3c1   :  { %v1221_v40 = vsub.f32 %v1207_v1, %v1220_v32  ;;  %v1222_v46 = vsub.f32 %v1208_v31, %v1220_v32  ;;  %v1223_v39 = vsub.f32 %v1209_v2, %v1220_v32  ;;  %v1224_v36 = vsub.f32 %v1210_v6, %v1220_v32  ;;  %v1591_v31 = vld [vmem:[%s3143_s11 + $0x30] sm:$0xff]  ;;  %v1590_v6 = vld [vmem:[%s3143_s11 + $0x28] sm:$0xff] }
 0x3c3   :  { %v1225_v35 = vmul.f32 1.442695, %v1221_v40  ;;  %v1227_v12 = vmul.f32 1.442695, %v1222_v46  ;;  %v1229_v9 = vmul.f32 1.442695, %v1223_v39 }
 0x3c4   :  { %v1231_v8 = vmul.f32 1.442695, %v1224_v36  ;;  %v1587_v39 = vld [vmem:[%s3143_s11 + $0x10] sm:$0xff]  ;;  %v1586_v36 = vld [vmem:[%s3143_s11 + $0x8] sm:$0xff] }
 0x3c5   :  { %2161 = vpow2.f32 %v1225_v35  ;;  %v1585_v35 = vld [vmem:[%s3143_s11] sm:$0xff] }
 0x3c6   :  { %2163 = vpow2.f32 %v1227_v12  ;;  %v1841_v12 = vld [vmem:[%s3142_s10] ss:$0 sm:$0xff] }
 0x3c7   :  { %2165 = vpow2.f32 %v1229_v9 }
 0x3c8   :  { %2167 = vpow2.f32 %v1231_v8 }
 0x3d2   :  { %v2162_v30 = vpop.eup %2161 }
 0x3d3   :  { %v2164_v7 = vpop.eup %2163  ;;  %v1233_v13 = vsel %vm1211_vm4, %v2162_v30, 0.0 }
 0x3d4   :  { %v2166_v14 = vpop.eup %2165  ;;  %v1234_v15 = vsel %vm1211_vm4, %v2164_v7, 0.0 }
 0x3d5   :  { %v2168_v16 = vpop.eup %2167  ;;  %v1235_v17 = vadd.f32 %v1234_v15, %v1233_v13  ;;  %v1236_v18 = vsel %vm1211_vm4, %v2166_v14, 0.0  ;;  %v1843_v13 = vld [vmem:[%s3144_s12] ss:$0 sm:$0xff] }
 0x3d6   :  { %v1238_v20 = vsel %vm1211_vm4, %v2168_v16, 0.0 }
 0x3d7   :  { %v1237_v19 = vadd.f32 %v1236_v18, %v1235_v17 }
 0x3d9   :  { %v1239_v21 = vadd.f32 %v1238_v20, %v1237_v19 }
 0x3db   :  { %1240 = vadd.xlane.f32.xlu1 %v1239_v21 }
 0x3ec   :  { %1408 = vperm.xlu1 %2158, %v1404_v22  }
 0x464   :  { %v1241_v25 = vpop.xlane.xlu1 %1240 }
 0x465   :  { %2169 = vrcp.f32 %v1241_v25 }
 0x468   :  { %v1409_v27 = vpop.permute.xlu1 %1408 }
 0x469   :  { %vm1410_vm5 = vcmp.eq.s32.totalorder %v1406_v26, %v1409_v27 }
 0x46a   :  { %v1839_v47 = vsel %vm1410_vm5, 1.0, %v2184_v24 }
 0x472   :  { %v2170_v28 = vpop.eup %2169 }
 0x473   :  { %v1244_v29 = vmul.f32 %v2170_v28, %v2164_v7  ;;  %v1246_v37 = vmul.f32 %v2170_v28, %v2168_v16  ;;  %v1243_v38 = vmul.f32 %v2170_v28, %v2162_v30  ;;  %v1245_v42 = vmul.f32 %v2170_v28, %v2166_v14 }
 0x475   :  { %1311 = vmatprep.mubr.f32.mxu0 %v1244_v29  ;;  %1381 = vmatprep.mubr.f32.mxu1 %v1246_v37 }
 0x476   :  { %1312 = vmatmul.mubr.f32.vlgmr.msra.gmra.mxu0 %v1243_v38  ;;  %1382 = vmatmul.mubr.f32.vlgmr.msra.gmra.mxu1 %v1245_v42 }
 0x477   :  { %2107 = vmatpush3.msra.mxu0 %v1413_v44  ;;  %2108 = vmatprep.mubr.msk.f32.mxu0 %vm2185_vm6, %v2184_v24 }
 0x478   :  { %2111 = vmatprep.subr.mxu0 %v2184_v24  ;;  %2146 = vmatprep.mubr.msk.f32.mxu1 %vm2185_vm6, %v2184_v24 }
 0x479   :  { %2131 = vmatpush3.msra.mxu1 %v1592_v4 }
 0x47a   :  { %2109 = vmatmul.mubr.msk.f32.vlgmr.msra.gmra.mxu0 %vm1414_vm7, %v1839_v47  ;;  %2132 = vmatprep.subr.mxu1 %v2184_v24 }
 0x47b   :  { %2127 = vmatprep.mubr.msk.f32.mxu0 %vm2185_vm6, %v2184_v24  ;;  %2112 = vmatpush3.msra.mxu0 %v1502_v23 }
 0x47c   :  { %2113 = vmatprep.subr.mxu0 %v2184_v24  ;;  %2133 = vmatpush3.msra.mxu1 %v1591_v31 }
 0x47d   :  { %2114 = vmatpush3.msra.mxu0 %v1501_v48  ;;  %2134 = vmatprep.subr.mxu1 %v2184_v24 }
 0x47e   :  { %2115 = vmatprep.subr.mxu0 %v2184_v24  ;;  %2135 = vmatpush3.msra.mxu1 %v1590_v6 }
 0x47f   :  { %2116 = vmatpush3.msra.mxu0 %v1500_v49  ;;  %2136 = vmatprep.subr.mxu1 %v2184_v24 }
 0x480   :  { %2117 = vmatprep.subr.mxu0 %v2184_v24  ;;  %2137 = vmatpush3.msra.mxu1 %v1589_v10 }
 0x481   :  { %2118 = vmatpush3.msra.mxu0 %v1499_v50  ;;  %2138 = vmatprep.subr.mxu1 %v2184_v24 }
 0x482   :  { %2119 = vmatprep.subr.mxu0 %v2184_v24  ;;  %2139 = vmatpush3.msra.mxu1 %v1588_v33 }
 0x483   :  { %2120 = vmatpush3.msra.mxu0 %v1498_v51  ;;  %2140 = vmatprep.subr.mxu1 %v2184_v24 }
 0x484   :  { %2121 = vmatprep.subr.mxu0 %v2184_v24  ;;  %2141 = vmatpush3.msra.mxu1 %v1587_v39 }
 0x485   :  { %2122 = vmatpush3.msra.mxu0 %v1497_v52  ;;  %2142 = vmatprep.subr.mxu1 %v2184_v24 }
 0x486   :  { %2123 = vmatprep.subr.mxu0 %v2184_v24  ;;  %2143 = vmatpush3.msra.mxu1 %v1586_v36 }
 0x487   :  { %2124 = vmatpush3.msra.mxu0 %v1496_v53  ;;  %2144 = vmatprep.subr.mxu1 %v2184_v24 }
 0x488   :  { %2125 = vmatprep.subr.mxu0 %v2184_v24  ;;  %2145 = vmatpush3.msra.mxu1 %v1585_v35 }
 0x489   :  { %2126 = vmatpush3.msra.mxu0 %v1495_v54 }
 0x536   :  { %v2026_v55 = vpop.f32.mrf.mxu0  ;;  %v2061_v56 = vpop.f32.mrf.mxu1 }
 0x538   :  { %v2027_v57 = vpop.f32.mrf.mxu0  ;;  %v2062_v58 = vpop.f32.mrf.mxu1 }
 0x539   :  { %v2028_v59 = vadd.f32 %v2027_v57, %v2026_v55  ;;  %v2063_v60 = vadd.f32 %v2062_v58, %v2061_v56 }
 0x53a   :  { %v1484_v61 = vpop.f32.mrf.mxu0 }
 0x53b   :  { %v1384_v62 = vadd.f32 %v2063_v60, %v2028_v59  ;;  %1489 = vrot.lane.b32.xlu0 %v1484_v61, %s2186_s29 }
 0x53c   :  { %v2110_v63 = vpop.f32.mrf.mxu0 }
 0x53d   :  { %v1388_v1 = vsub.f32 %v1384_v62, %v3243_v0 }
 0x53f   :  { %v1389_v2 = vmul.f32 %v1388_v1, %v1388_v1 }
 0x541   :  { %v1391_v3 = vsel %vm1390_vm8, %v1389_v2, 0.0 }
 0x542   :  { %1392 = vadd.xlane.f32.xlu1 %v1391_v3 }
 0x5ad   :  { %v1490_v41 = vpop.permute.xlu0 %1489 }
 0x5ae   :  { %v1492_v45 = vsel %vm239_vm2, %v1384_v62, %v1490_v41 }
 0x5af   :  { %1494 = vst.msk [vmem:[%s3145_s13] sm:$0x3] %vm1493_vm9, %v1492_v45  ;;  %2128 = vmatmul.mubr.msk.f32.vlgmr.msra.gmra.mxu0 %vm1510_vm10, %v1492_v45 }
 0x5cb   :  { %v1393_v43 = vpop.xlane.xlu1 %1392 }
 0x5cc   :  { %v1394_v34 = vrot.slane %v1393_v43, 4 }
 0x5ce   :  { %v1395_v11 = vadd.f32 %v1394_v34, %v1393_v43 }
 0x5d0   :  { %v1396_v5 = vrot.slane %v1395_v11, 2 }
 0x5d2   :  { %v1397_v32 = vadd.f32 %v1396_v5, %v1395_v11 }
 0x5d4   :  { %v1398_v40 = vrot.slane %v1397_v32, 1 }
 0x5d6   :  { %v1399_v46 = vadd.f32 %v1398_v40, %v1397_v32 }
 0x5d8   :  { %2149 = vpush %v1399_v46 }
 0x609   :  { %s2150_s24 = spop %2149 }
 0x60a   :  { %s1401_s25 = smul.f32 0.03125, %s2150_s24 }
 0x60c   :  { %1403 = sst [smem:[#allocation2]] %s1401_s25 }
 0x60d   :  { %1686 = dma.smem_to_hbm %s2187_s0, 16, %s3147_s15, [#allocation3]  }
 0x66f   :  { %v1580_v9 = vpop.f32.mrf.mxu0 }
 0x670   :  { %v1581_v8 = vadd.f32 %v1841_v12, %v1580_v9 }
 0x671   :  { %v2129_v30 = vpop.f32.mrf.mxu0 }
 0x672   :  { %v1584_v7 = vmax.f32 %v1581_v8, 0.0 }
 0x674   :  { %2147 = vmatmul.mubr.msk.f32.vlgmr.msra.gmra.mxu1 %vm1510_vm10, %v1584_v7 }
 0x734   :  { %v1669_v14 = vpop.f32.mrf.mxu1 }
 0x735   :  { %v1670_v15 = vadd.f32 %v1843_v13, %v1669_v14 }
 0x736   :  { %v2148_v16 = vpop.f32.mrf.mxu1 }
 0x737   :  { %1674 = vst.msk [vmem:[%s3146_s14] sm:$0x3] %vm1673_vm11, %v1670_v15 }
 0x738   :  { %2179 = dma.done.wait [#allocation3], 16  }
 0x739   :  { %2180 = vsyncadd [#allocation3], 4294967280 }
 0x73a   :  { %1694 = sfence }
 0x73b   :  { %1695 = vsyncpa [#allocation3], 1 }

</bundles_post_ra>
